<compile_context>
chip_gen: v6e
topology: v6e:2x2x1
jax: 0.10.0
libtpu: 0.0.40
codegen_flags: <defaults>
</compile_context>

<pallas_src>
import jax
import jax.numpy as jnp
from jax.experimental import pallas as pl
from jax.experimental.pallas import tpu as pltpu


_LANE = 128      # TPU lane width (last dim)
_SUBLANE = 8     # f32 sublane count (second-to-last dim)


def _round_up(x, m):
    return ((x + m - 1) // m) * m


def mlp_kernel(x_ref, w1_ref, b1_ref, w2_ref, b2_ref, o_ref):
    """One batch tile of:  relu(relu(x @ w1 + b1) @ w2 + b2).

    x_ref:  (tb, Fp)  bf16   (tiled over batch)
    w1_ref: (Fp, Hp)  bf16   (resident across grid steps)
    b1_ref: (1,  Hp)  f32
    w2_ref: (Hp, Hp)  bf16   (resident)
    b2_ref: (1,  Hp)  f32
    o_ref:  (tb, Hp)  f32    (lane-dense: Hp is a multiple of 128)
    """
    # Layer 1: native bf16 MXU matmul, f32 accumulation; bias + ReLU in f32.
    h = jnp.dot(x_ref[...], w1_ref[...], preferred_element_type=jnp.float32)
    h = jnp.maximum(h + b1_ref[...], 0.0)
    # Layer 2: cast activations to bf16 for another native bf16 MXU pass.
    h2 = jnp.dot(h.astype(w2_ref.dtype), w2_ref[...],
                 preferred_element_type=jnp.float32)
    o_ref[...] = jnp.maximum(h2 + b2_ref[...], 0.0).astype(o_ref.dtype)


def _pick_tile_b(B):
    """Batch tile: sublane-aligned, >=2 grid steps when possible, MXU-friendly."""
    if B < 16:
        return _round_up(B, _SUBLANE)
    if B <= 512:
        # Split in two so the pipeline has >=2 steps (and megacore can split).
        return _round_up((B + 1) // 2, _SUBLANE)
    # Large batch: MXU-aligned 256..1024-row tiles -> >= ~8 pipelined grid steps.
    tb = _round_up(max(B // 8, 256), 256)
    return min(tb, 1024)


def fashion_mnist_model_v1(x_nchw, w1, b1, w2, b2, *, tile_b=None):
    """FashionMNISTModelV1 forward: Flatten -> Linear -> ReLU -> Linear -> ReLU.

    x_nchw: (B, C, H, W)
    w1: (F, Hdn),   b1: (Hdn,)   -- Linear-1 weight pre-transposed to (in, out)
    w2: (Hdn, Hdn), b2: (Hdn,)   -- Linear-2 weight pre-transposed
    returns: (B, Hdn) float32
    """
    B = int(x_nchw.shape[0])
    F = int(x_nchw.shape[1] * x_nchw.shape[2] * x_nchw.shape[3])
    Hdn = int(w1.shape[1])

    # ---- glue (host-side layout plumbing: reshape + zero-pad, all cheap) ----
    # nn.Flatten on NCHW == row-major reshape to (B, F).
    x2d = x_nchw.reshape(B, F)

    # Lane-dense padding: round feature / hidden dims up to 128 so MXU tiles and
    # the output store are full-width.  Zero padding is exact for the matmuls.
    Fp = _round_up(F, _LANE)
    Hp = _round_up(Hdn, _LANE)

    tb = _pick_tile_b(B) if tile_b is None else _round_up(int(tile_b), _SUBLANE)
    Bp = _round_up(B, tb)          # ragged batches are padded, not rejected
    grid = (Bp // tb,)

    # bf16 activations/weights halve HBM traffic on this mem-bound kernel;
    # biases stay f32 and the matmuls accumulate in f32.
    xp = jnp.zeros((Bp, Fp), jnp.bfloat16).at[:B, :F].set(x2d.astype(jnp.bfloat16))
    w1p = jnp.zeros((Fp, Hp), jnp.bfloat16).at[:F, :Hdn].set(w1.astype(jnp.bfloat16))
    w2p = jnp.zeros((Hp, Hp), jnp.bfloat16).at[:Hdn, :Hdn].set(w2.astype(jnp.bfloat16))
    b1p = jnp.zeros((1, Hp), jnp.float32).at[0, :Hdn].set(b1.astype(jnp.float32))
    b2p = jnp.zeros((1, Hp), jnp.float32).at[0, :Hdn].set(b2.astype(jnp.float32))

    # ---- VMEM budget: 2x-buffered x/out tiles + (2x-buffered) resident weights
    x_tile = tb * Fp * 2
    o_tile = tb * Hp * 4
    w_bytes = Fp * Hp * 2 + Hp * Hp * 2 + 2 * Hp * 4
    need = 2 * (x_tile + o_tile + w_bytes) + (2 << 20)      # + scratch headroom
    vmem_limit = int(min(64 << 20, max(32 << 20, need)))    # v7x-safe cap

    cost = pl.CostEstimate(
        flops=2 * Bp * (Fp * Hp + Hp * Hp),
        transcendentals=0,
        bytes_accessed=Bp * Fp * 2 + Bp * Hp * 4 + w_bytes,
    )

    out = pl.pallas_call(
        mlp_kernel,
        out_shape=jax.ShapeDtypeStruct((Bp, Hp), jnp.float32),
        grid_spec=pltpu.PrefetchScalarGridSpec(
            num_scalar_prefetch=0,
            grid=grid,
            in_specs=[
                pl.BlockSpec((tb, Fp), lambda i: (i, 0)),    # x: tiled over batch
                pl.BlockSpec((Fp, Hp), lambda i: (0, 0)),    # w1: resident
                pl.BlockSpec((1, Hp), lambda i: (0, 0)),     # b1: resident
                pl.BlockSpec((Hp, Hp), lambda i: (0, 0)),    # w2: resident
                pl.BlockSpec((1, Hp), lambda i: (0, 0)),     # b2: resident
            ],
            out_specs=pl.BlockSpec((tb, Hp), lambda i: (i, 0)),
        ),
        compiler_params=pltpu.CompilerParams(
            dimension_semantics=("parallel",),   # megacore-shard batch
            vmem_limit_bytes=vmem_limit,
        ),
        cost_estimate=cost,
    )(xp, w1p, b1p, w2p, b2p)

    # Strip batch / lane padding.
    return out[:B, :Hdn]


if __name__ == "__main__":
    # Small shapes consistent with the module: batch=16, C=1, H=W=16
    #   -> in_shape = 256, hidden_units = 32  (grid gets 2 steps -> pipelined)
    B, C, H, W = 16, 1, 16, 16
    in_shape = C * H * W
    hidden_units = 32

    key = jax.random.PRNGKey(0)
    kx, kw1, kb1, kw2, kb2 = jax.random.split(key, 5)

    x = jax.random.normal(kx, (B, C, H, W), dtype=jnp.float32)

    # Deterministic parameter init (PyTorch-Linear-like uniform bound).
    bound1 = 1.0 / jnp.sqrt(in_shape)
    w1 = jax.random.uniform(kw1, (in_shape, hidden_units), jnp.float32, -bound1, bound1)
    b1 = jax.random.uniform(kb1, (hidden_units,), jnp.float32, -bound1, bound1)
    bound2 = 1.0 / jnp.sqrt(hidden_units)
    w2 = jax.random.uniform(kw2, (hidden_units, hidden_units), jnp.float32, -bound2, bound2)
    b2 = jax.random.uniform(kb2, (hidden_units,), jnp.float32, -bound2, bound2)

    out = jax.block_until_ready(fashion_mnist_model_v1(x, w1, b1, w2, b2))
    assert out.shape == (B, hidden_units)

    # Tight check against a reference using the SAME bf16 quantization of x/w/h
    # (the kernel's intentional mixed-precision scheme), f32 math otherwise.
    q = lambda a: a.astype(jnp.bfloat16).astype(jnp.float32)
    x2d = x.reshape(B, -1)
    h_ref = jnp.maximum(q(x2d) @ q(w1) + b1, 0.0)
    ref_q = jnp.maximum(q(h_ref) @ q(w2) + b2, 0.0)
    assert jnp.allclose(out, ref_q, atol=2e-4, rtol=2e-4), float(
        jnp.max(jnp.abs(out - ref_q)))

    # Loose check against the pure-f32 PyTorch semantics (bf16 precision trade).
    ref32 = jnp.maximum(jnp.maximum(x2d @ w1 + b1, 0.0) @ w2 + b2, 0.0)
    assert jnp.allclose(out, ref32, atol=5e-2, rtol=5e-2), float(
        jnp.max(jnp.abs(out - ref32)))

    print("KERNEL_OK")
</pallas_src>

<mosaic_0001>
module attributes {stable_mosaic.version = 11 : i64} {
  func.func @mlp_kernel(%arg0: i32, %arg1: memref<8x256xbf16, #tpu.memory_space<vmem>>, %arg2: memref<256x128xbf16, #tpu.memory_space<vmem>>, %arg3: memref<1x128xf32, #tpu.memory_space<vmem>>, %arg4: memref<128x128xbf16, #tpu.memory_space<vmem>>, %arg5: memref<1x128xf32, #tpu.memory_space<vmem>>, %arg6: memref<8x128xf32, #tpu.memory_space<vmem>>) attributes {dimension_semantics = [#tpu.dimension_semantics<parallel>], iteration_bounds = array<i64: 2>, scalar_prefetch = 0 : i64, scratch_operands = 0 : i64, tpu.core_type = #tpu.core_type<tc>, window_params = [{transform_indices = @transform_0, window_bounds = array<i64: 8, 256>}, {pipeline_mode = #tpu.pipeline_mode<synchronous>, transform_indices = @transform_1, window_bounds = array<i64: 256, 128>}, {pipeline_mode = #tpu.pipeline_mode<synchronous>, transform_indices = @transform_2, window_bounds = array<i64: 1, 128>}, {pipeline_mode = #tpu.pipeline_mode<synchronous>, transform_indices = @transform_3, window_bounds = array<i64: 128, 128>}, {pipeline_mode = #tpu.pipeline_mode<synchronous>, transform_indices = @transform_4, window_bounds = array<i64: 1, 128>}, {transform_indices = @transform_5, window_bounds = array<i64: 8, 128>}]} {
    %c0 = arith.constant 0 : index
    %c0_0 = arith.constant 0 : index
    %0 = vector.load %arg1[%c0, %c0_0] : memref<8x256xbf16, #tpu.memory_space<vmem>>, vector<8x256xbf16>
    %c0_1 = arith.constant 0 : index
    %c0_2 = arith.constant 0 : index
    %1 = vector.load %arg2[%c0_1, %c0_2] : memref<256x128xbf16, #tpu.memory_space<vmem>>, vector<256x128xbf16>
    %cst = arith.constant dense<0.000000e+00> : vector<8x128xf32>
    %2 = tpu.matmul %0, %1, %cst {dimension_numbers = #tpu.dot_dimension_numbers<[1], [0], [0], [1], [0, 0, 1, 1], [], []>} : vector<8x256xbf16>, vector<256x128xbf16>, vector<8x128xf32> -> vector<8x128xf32>
    %c0_3 = arith.constant 0 : index
    %c0_4 = arith.constant 0 : index
    %3 = vector.load %arg3[%c0_3, %c0_4] : memref<1x128xf32, #tpu.memory_space<vmem>>, vector<1x128xf32>
    %4 = vector.broadcast %3 : vector<1x128xf32> to vector<8x128xf32>
    %5 = arith.addf %2, %4 : vector<8x128xf32>
    %cst_5 = arith.constant 0.000000e+00 : f32
    %6 = vector.broadcast %cst_5 : f32 to vector<8x128xf32>
    %7 = arith.maximumf %5, %6 : vector<8x128xf32>
    %8 = arith.truncf %7 : vector<8x128xf32> to vector<8x128xbf16>
    %c0_6 = arith.constant 0 : index
    %c0_7 = arith.constant 0 : index
    %9 = vector.load %arg4[%c0_6, %c0_7] : memref<128x128xbf16, #tpu.memory_space<vmem>>, vector<128x128xbf16>
    %cst_8 = arith.constant dense<0.000000e+00> : vector<8x128xf32>
    %10 = tpu.matmul %8, %9, %cst_8 {dimension_numbers = #tpu.dot_dimension_numbers<[1], [0], [0], [1], [0, 0, 1, 1], [], []>} : vector<8x128xbf16>, vector<128x128xbf16>, vector<8x128xf32> -> vector<8x128xf32>
    %c0_9 = arith.constant 0 : index
    %c0_10 = arith.constant 0 : index
    %11 = vector.load %arg5[%c0_9, %c0_10] : memref<1x128xf32, #tpu.memory_space<vmem>>, vector<1x128xf32>
    %12 = vector.broadcast %11 : vector<1x128xf32> to vector<8x128xf32>
    %13 = arith.addf %10, %12 : vector<8x128xf32>
    %cst_11 = arith.constant 0.000000e+00 : f32
    %14 = vector.broadcast %cst_11 : f32 to vector<8x128xf32>
    %15 = arith.maximumf %13, %14 : vector<8x128xf32>
    %c0_12 = arith.constant 0 : index
    %c0_13 = arith.constant 0 : index
    %16 = vector.load %arg6[%c0_12, %c0_13] : memref<8x128xf32, #tpu.memory_space<vmem>>, vector<8x128xf32>
    tpu.vector_store %arg6[%c0_12, %c0_13], %15 {strides = array<i32>} : memref<8x128xf32, #tpu.memory_space<vmem>>, vector<8x128xf32>,
    return
  }
  func.func @transform_0(%arg0: i32) -> (i32, i32) {
    %c0_i32 = arith.constant 0 : i32
    %c0_i32_0 = arith.constant 0 : i32
    return %arg0, %c0_i32 : i32, i32
  }
  func.func @transform_1(%arg0: i32) -> (i32, i32) {
    %c0_i32 = arith.constant 0 : i32
    %c0_i32_0 = arith.constant 0 : i32
    %c0_i32_1 = arith.constant 0 : i32
    return %c0_i32, %c0_i32_0 : i32, i32
  }
  func.func @transform_2(%arg0: i32) -> (i32, i32) {
    %c0_i32 = arith.constant 0 : i32
    %c0_i32_0 = arith.constant 0 : i32
    %c0_i32_1 = arith.constant 0 : i32
    return %c0_i32, %c0_i32_0 : i32, i32
  }
  func.func @transform_3(%arg0: i32) -> (i32, i32) {
    %c0_i32 = arith.constant 0 : i32
    %c0_i32_0 = arith.constant 0 : i32
    %c0_i32_1 = arith.constant 0 : i32
    return %c0_i32, %c0_i32_0 : i32, i32
  }
  func.func @transform_4(%arg0: i32) -> (i32, i32) {
    %c0_i32 = arith.constant 0 : i32
    %c0_i32_0 = arith.constant 0 : i32
    %c0_i32_1 = arith.constant 0 : i32
    return %c0_i32, %c0_i32_0 : i32, i32
  }
  func.func @transform_5(%arg0: i32) -> (i32, i32) {
    %c0_i32 = arith.constant 0 : i32
    %c0_i32_0 = arith.constant 0 : i32
    return %arg0, %c0_i32 : i32, i32
  }
}

</mosaic_0001>

<bundles_post_ra>
// kernel: tpu_custom_call.1
= control target key start
LH: loop header
LB: loop body
LE: loop exit
PB: predicated region body
PF: predicated region fallthrough
CT: control target
= control target key end

     0   :  { %10 = vsyncpa [#allocation3], 0  ;;  %s1250_s0 = inlined_call_operand.hbm [shape: bf16[16,256], index: 0, kind: input, shape index: {}]   ;;  %s1251_s1 = inlined_call_operand.hbm [shape: bf16[256,128], index: 1, kind: input, shape index: {}]   ;;  %s1252_s2 = inlined_call_operand.vmem [shape: f32[1,128], index: 2, kind: input, shape index: {}]   ;;  %s1253_s3 = inlined_call_operand.hbm [shape: bf16[128,128], index: 3, kind: input, shape index: {}]   ;;  %s1254_s4 = inlined_call_operand.vmem [shape: f32[1,128], index: 4, kind: input, shape index: {}]   ;;  %s1255_s5 = inlined_call_operand.hbm [shape: f32[16,128], index: 5, kind: output, shape index: {}]  }
   0x1   :  { %12 = vsyncpa [#allocation3 + $0x1], 0 }
   0x2   :  { %13 = vsyncpa [#allocation6], 0 }
   0x3   :  { %14 = vsyncpa [#allocation4], 0 }
   0x4   :  { %16 = vsyncpa [#allocation4 + $0x1], 0  ;;  %s1054_s18 = smov 0   ;;  %s1056_s19 = smov 0  }
   0x5   :  { %s1058_s20 = smov 0   ;;  %s1060_s21 = smov 0  }
   0x6 LB: > { %s1075_s22 = sadd.s32 4294967295, %s1014_s21   ;;  %s672_s23 = sadd.s32 4294967294, %s1014_s21   ;;  %s1014_s21 = sphi %s1060_s21, %s1277_s21   ;;  %s1010_s20 = sphi %s1058_s20, %s1276_s20   ;;  %s1006_s19 = sphi %s1056_s19, %s1275_s19   ;;  %s1002_s18 = sphi %s1054_s18, %s1274_s18  }
   0x7   : > { %p42_p0 = scmp.ne.s32.totalorder %s1006_s19, %s1002_s18  ;;  %p1256_p1 = scmp.eq.s32.totalorder %s1075_s22, 0 }
   0x8   : > { %p156_p3 = scmp.eq.s32.totalorder %s672_s23, 1  ;;  %p673_p5 = scmp.ge.s32.totalorder %s1014_s21, 1 }
   0x9   : > { %p1084_p4 = por %p1256_p1, %p42_p0  ;;  %p163_p7 = scmp.lt.s32.totalorder %s1014_s21, 3 }
   0xa   : > { %p1089_p6 = por %p156_p3, %p42_p0  ;;  %s1016_s27 = smov [#allocation5]  }
   0xb   : > { %s1260_s24 = scalar_select %p1084_p4, 1, 0 }
   0xc   : > { %s1261_s25 = scalar_select %p1089_p6, 1, 0 }
   0xd   : > { %p1094_p8 = pnand %p673_p5, %p163_p7  ;;  %s175_s28 = sshll.u32 %s1016_s27, 4  ;;  %s176_s28 = int_to_ptr.vmem [resolvable:$true] %s175_s28 }
   0xe   : > { %s1017_s30 = smov [#allocation7]   ;;  %s877_s7 = scalar_lea.vmem %s176_s28, 2048 }
   0xf   : > { %s1262_s26 = scalar_select %p1094_p8, 1, 0 }
  0x10   : > { %p781_p9 = pneg %p1094_p8  ;;  %s191_s6 = sshll.u32 %s1017_s30, 4  ;;  %s192_s6 = int_to_ptr.vmem [resolvable:$true] %s191_s6 }
  0x11   : > { %p878_p13 = scmp.ne.s32.totalorder %s176_s28, %s877_s7  ;;  %p885_p5 = scmp.lt.s32.totalorder %s176_s28, %s176_s28 }
  0x12   : > { %p1103_p11 = pnand %p781_p9, %p1256_p1  ;;  %p886_p7 = scmp.lt.s32.totalorder %s877_s7, %s877_s7 }
  0x14   : > { %p868_p12 = pneg %p1103_p11  ;;  %p887_p10 = por %p886_p7, %p885_p5 }
  0x16   : > { %p880_p0 = pnand %p878_p13, %p868_p12 }
  0x18   : > { %p881_p3 = pneg %p880_p0 }
  0x1a   : > { %p888_p9 = pnand %p887_p10, %p881_p3 }
  0x1c   : > { %891 = shalt.err (!%p888_p9)
}
  0x1d   : > { %s1018_s8 = smov 64   ;;  %s1019_s9 = smov 4  }
  0x1e   : > { %784 = dma.hbm_to_vmem [thread:$0]  (!%p1103_p11), %s1251_s1, 2048, %s176_s28, [#allocation6], %s1018_s8, %s1018_s8, %s1019_s9  }
  0x1f   : > { %s903_s12 = scalar_lea.vmem %s192_s6, 1024  ;;  %p911_p2 = scmp.lt.s32.totalorder %s192_s6, %s192_s6 }
  0x20   : > { %p904_p1 = scmp.ne.s32.totalorder %s192_s6, %s903_s12  ;;  %p912_p6 = scmp.lt.s32.totalorder %s903_s12, %s903_s12 }
  0x22   : > { %p906_p13 = pnand %p904_p1, %p868_p12  ;;  %p913_p5 = por %p912_p6, %p911_p2 }
  0x24   : > { %p907_p0 = pneg %p906_p13 }
  0x26   : > { %p914_p10 = pnand %p913_p5, %p907_p0 }
  0x28   : > { %917 = shalt.err (!%p914_p10)
}
  0x29   : > { %787 = dma.hbm_to_vmem [thread:$0]  (!%p1103_p11), %s1253_s3, 1024, %s192_s6, [#allocation6], %s1018_s8, %s1018_s8, %s1019_s9  }
  0x2a   : > { %s1126_s15 = sadd.s32 1, %s1014_s21   ;;  %s29_s16 = sadd.s32 1, %s1010_s20 }
  0x2b   : > { %s26_s17 = ssub.s32 %s1014_s21, %s1126_s15  ;;  %p36_p1 = scmp.ne.s32.totalorder %s1010_s20, %s1006_s19 }
  0x2c   : > { %p27_p2 = scmp.eq.s32.totalorder %s26_s17, 0  ;;  %p37_p6 = scmp.eq.s32.totalorder %s1014_s21, 0 }
  0x2d   : > { %p1264_p12 = scmp.eq.s32.totalorder %s1075_s22, 1  ;;  %p798_p7 = scmp.lt.s32.totalorder %s1014_s21, 2 }
  0x2e   : > { %s1142_s27 = scalar_select %p27_p2, %s1010_s20, %s29_s16  }
  0x2f   : > { %p1136_p3 = por %p1264_p12, %p36_p1  ;;  %p38_p9 = por %p37_p6, %p36_p1 }
  0x30   : > { %s208_s28 = sand.u32 1, %s1010_s20   ;;  %s717_s30 = sshll.u32 %s1014_s21, 7 }
  0x31   : > { %s1265_s23 = scalar_select %p1136_p3, 1, 0 }
  0x32   : > { %s677_s29 = sshll.u32 %s208_s28, 3  ;;  %s1149_s8 = scalar_lea.hbm %s1250_s0, %s717_s30 }
  0x33   : > { %s212_s9 = scalar_lea.vmem [#allocation2], %s677_s29  ;;  %p1151_p11 = pnand %p798_p7, %p38_p9 }
  0x34   : > { %s220_s10 = sshll.u32 %s212_s9, 4  ;;  %s209_s12 = scalar_lea.sflag [#allocation3], %s208_s28  ;;  %s221_s10 = int_to_ptr.vmem [resolvable:$true] %s220_s10 }
  0x35   : > { %s918_s13 = scalar_lea.hbm %s1149_s8, 128  ;;  %p920_p0 = pneg %p1151_p11 }
  0x36   : > { %p919_p13 = scmp.ne.s32.totalorder %s1149_s8, %s918_s13  ;;  %s923_s17 = scalar_lea.hbm %s1250_s0, 256 }
  0x37   : > { %p924_p1 = scmp.lt.s32.totalorder %s1149_s8, %s1250_s0  ;;  %p925_p2 = scmp.lt.s32.totalorder %s923_s17, %s918_s13 }
  0x38   : > { %p921_p5 = pnand %p920_p0, %p919_p13 }
  0x39   : > { %p926_p6 = por %p925_p2, %p924_p1 }
  0x3a   : > { %p922_p10 = pneg %p921_p5 }
  0x3c   : > { %p927_p12 = pnand %p926_p6, %p922_p10 }
  0x3e   : > { %930 = shalt.err (!%p927_p12)
}
  0x3f   : > { %s931_s6 = scalar_lea.vmem %s221_s10, 128  ;;  %s1020_s28 = smov [#allocation2]  }
  0x40   : > { %p932_p7 = scmp.ne.s32.totalorder %s221_s10, %s931_s6  ;;  %s936_s7 = sshll.u32 %s1020_s28, 4  ;;  %s937_s7 = int_to_ptr.vmem [resolvable:$false] %s936_s7 }
  0x41   : > { %s938_s9 = scalar_lea.vmem %s937_s7, 256  ;;  %p939_p13 = scmp.lt.s32.totalorder %s221_s10, %s937_s7 }
  0x42   : > { %p934_p9 = pnand %p932_p7, %p920_p0  ;;  %p940_p5 = scmp.lt.s32.totalorder %s938_s9, %s931_s6 }
  0x44   : > { %p935_p3 = pneg %p934_p9  ;;  %p941_p4 = por %p940_p5, %p939_p13 }
  0x46   : > { %p942_p8 = pnand %p941_p4, %p935_p3 }
  0x48   : > { %945 = shalt.err (!%p942_p8)
}
  0x49   : > { %791 = dma.hbm_to_vmem [thread:$0]  (!%p1151_p11), %s1149_s8, 128, %s221_s10, %s209_s12  }
  0x4a   : > { %p1267_p10 = scmp.ne.s32.totalorder %s1262_s26, 0 }
  0x4b   : > { %s1172_s13 = sand.u32 (!%p1267_p10), 1, %s1006_s19   ;;  %p1268_p4 = scmp.ne.s32.totalorder (!%p1267_p10), %s1260_s24, 0 }
  0x4c   : > { %229 = sbr.rel (%p1267_p10) target bundleno = 532 (0x214), region = 40  ;;  %s681_s14 = sshll.u32 (!%p1267_p10), %s1172_s13, 3 }
  0x4d   : > { %s232_s16 = scalar_lea.sflag (!%p1267_p10), [#allocation3], %s1172_s13  ;;  %s235_s17 = scalar_lea.vmem (!%p1267_p10), [#allocation2], %s681_s14 }
  0x51   : > { %989 = dma.done.wait (%p1268_p4), %s232_s16, 128  }
  0x52   : > { %991 = vsyncadd (%p1268_p4), %s232_s16, 4294967168  ;;  %p1269_p8 = scmp.eq.s32.totalorder %s1075_s22, 0 }
  0x54   : > { %993 = dma.done.wait (%p1269_p8), [#allocation6], 3072   ;;  %p1270_p3 = pmov %p1269_p8 }
  0x55   : > { %v1021_v0 = vmov 0.0   ;;  %v840_v1 = vld [vmem:[#allocation5 + $0x78] sm:$0xff]   ;;  %v842_v3 = vld [vmem:[#allocation5 + $0x70] sm:$0xff]   ;;  %v844_v5 = vld [vmem:[#allocation5 + $0x68] sm:$0xff]   ;;  %vm1022_vm0 = vmmov 0   ;;  %s714_s11 = sshll.u32 %s1075_s22, 7 }
  0x56   : > { %995 = vsyncadd (%p1270_p3), [#allocation6], 4294964224  ;;  %749 = vmatprep.subr.bf16.mxu1 %v1021_v0  ;;  %v841_v2 = vld [vmem:[#allocation5 + $0x38] sm:$0xff]   ;;  %718 = vmatprep.subr.bf16.mxu0 %v840_v1  ;;  %v843_v4 = vld [vmem:[#allocation5 + $0x30] sm:$0xff]   ;;  %s269_s12 = scalar_lea.vmem [#allocation8], %s681_s14  ;;  %s1207_s28 = scalar_lea.hbm %s1255_s5, %s714_s11 }
  0x57   : > { %719 = vmatpush3.bf16.msra.mxu0 %v841_v2  ;;  %v845_v6 = vld [vmem:[#allocation5 + $0x28] sm:$0xff]   ;;  %v846_v7 = vld [vmem:[#allocation5 + $0x60] sm:$0xff]   ;;  %v848_v9 = vld [vmem:[#allocation5 + $0x58] sm:$0xff]   ;;  %765 = vmatprep.mubr.msk.bf16.mxu1 %vm1022_vm0, %v1021_v0  ;;  %s583_s30 = sshll.u32 %s269_s12, 4  ;;  %s570_s22 = scalar_lea.sflag [#allocation4], %s1172_s13  ;;  %s1209_s30 = int_to_ptr.vmem [resolvable:$true] %s583_s30 }
  0x58   : > { %720 = vmatprep.subr.bf16.mxu0 %v842_v3  ;;  %v847_v8 = vld [vmem:[#allocation5 + $0x20] sm:$0xff]   ;;  %v849_v10 = vld [vmem:[#allocation5 + $0x18] sm:$0xff]   ;;  %v850_v11 = vld [vmem:[#allocation5 + $0x50] sm:$0xff]   ;;  %s946_s7 = scalar_lea.vmem %s1209_s30, 128  ;;  %p1271_p0 = scmp.ne.s32.totalorder %s1265_s23, 0 }
  0x59   : > { %v271_v12 = vld [vmem:[%s235_s17] sm:$0xff]  ;;  %v852_v16 = vld [vmem:[#allocation5 + $0x48] sm:$0xff]   ;;  %v854_v19 = vld [vmem:[#allocation5 + $0x40] sm:$0xff]   ;;  %p947_p11 = scmp.ne.s32.totalorder %s1209_s30, %s946_s7  ;;  %s1023_s9 = smov [#allocation8]  }
  0x5a   : > { %v687_v13 = vcombine.high %v271_v12, %v271_v12  ;;  %v858_v14 = vld [vmem:[#allocation7 + $0x38] sm:$0xff]   ;;  %v851_v15 = vld [vmem:[#allocation5 + $0x10] sm:$0xff]   ;;  %v853_v18 = vld [vmem:[#allocation5 + $0x8] sm:$0xff]   ;;  %v686_v23 = vcombine.low %v271_v12, %v271_v12  ;;  %s950_s14 = sshll.u32 %s1023_s9, 4  ;;  %s951_s14 = int_to_ptr.vmem [resolvable:$false] %s950_s14 }
  0x5b   : > { %721 = vmatpush3.bf16.msra.mxu0 %v843_v4  ;;  %750 = vmatpush3.bf16.msra.mxu1 %v858_v14  ;;  %v859_v17 = vld [vmem:[#allocation7 + $0x30] sm:$0xff]   ;;  %v860_v20 = vld [vmem:[#allocation7 + $0x28] sm:$0xff]   ;;  %v855_v21 = vld [vmem:[#allocation5] sm:$0xff]   ;;  %p948_p1 = pnand %p947_p11, %p1271_p0  ;;  %s952_s16 = scalar_lea.vmem %s951_s14, 256 }
  0x5c   : > { %722 = vmatprep.subr.bf16.mxu0 %v844_v5  ;;  %446 = vmatprep.mubr.bf16.mxu0 %v687_v13  ;;  %v861_v22 = vld [vmem:[#allocation7 + $0x20] sm:$0xff]   ;;  %v862_v24 = vld [vmem:[#allocation7 + $0x18] sm:$0xff]   ;;  %v863_v25 = vld [vmem:[#allocation7 + $0x10] sm:$0xff]   ;;  %p953_p6 = scmp.lt.s32.totalorder %s1209_s30, %s951_s14  ;;  %p954_p12 = scmp.lt.s32.totalorder %s952_s16, %s946_s7 }
  0x5d   : > { %751 = vmatprep.subr.bf16.mxu1 %v1021_v0  ;;  %v864_v26 = vld [vmem:[#allocation7 + $0x8] sm:$0xff]   ;;  %v865_v27 = vld [vmem:[#allocation7] sm:$0xff]   ;;  %v685_v29 = vld [vmem:[%s1252_s2] ss:$0 sm:$0xff]  ;;  %p949_p2 = pneg %p948_p1 }
  0x5e   : > { %v704_v37 = vld [vmem:[%s1254_s4] ss:$0 sm:$0xff]  ;;  %p955_p7 = por %p954_p12, %p953_p6 }
  0x5f   : > { %723 = vmatpush3.bf16.msra.mxu0 %v845_v6  ;;  %752 = vmatpush3.bf16.msra.mxu1 %v859_v17 }
  0x60   : > { %724 = vmatprep.subr.bf16.mxu0 %v846_v7  ;;  %753 = vmatprep.subr.bf16.mxu1 %v1021_v0  ;;  %p956_p9 = pnand %p955_p7, %p949_p2 }
  0x63   : > { %725 = vmatpush3.bf16.msra.mxu0 %v847_v8  ;;  %754 = vmatpush3.bf16.msra.mxu1 %v860_v20 }
  0x64   : > { %726 = vmatprep.subr.bf16.mxu0 %v848_v9  ;;  %755 = vmatprep.subr.bf16.mxu1 %v1021_v0 }
  0x67   : > { %727 = vmatpush3.bf16.msra.mxu0 %v849_v10  ;;  %756 = vmatpush3.bf16.msra.mxu1 %v861_v22 }
  0x68   : > { %728 = vmatprep.subr.bf16.mxu0 %v850_v11  ;;  %757 = vmatprep.subr.bf16.mxu1 %v1021_v0 }
  0x6b   : > { %729 = vmatpush3.bf16.msra.mxu0 %v851_v15  ;;  %758 = vmatpush3.bf16.msra.mxu1 %v862_v24 }
  0x6c   : > { %730 = vmatprep.subr.bf16.mxu0 %v852_v16  ;;  %759 = vmatprep.subr.bf16.mxu1 %v1021_v0 }
  0x6f   : > { %731 = vmatpush3.bf16.msra.mxu0 %v853_v18  ;;  %760 = vmatpush3.bf16.msra.mxu1 %v863_v25 }
  0x70   : > { %732 = vmatprep.subr.bf16.mxu0 %v854_v19  ;;  %761 = vmatprep.subr.bf16.mxu1 %v1021_v0 }
  0x73   : > { %733 = vmatpush3.bf16.msra.mxu0 %v855_v21  ;;  %762 = vmatpush3.bf16.msra.mxu1 %v864_v26 }
  0x74   : > { %763 = vmatprep.subr.bf16.mxu1 %v1021_v0 }
  0x76   : > { %447 = vmatmul.mubr.bf16.vlgmr.msra.gmra.mxu0 %v686_v23 }
  0x77   : > { %764 = vmatpush3.bf16.msra.mxu1 %v865_v27 }
 0x136   : > { %v734_v28 = vpop.f32.mrf.mxu0 }
 0x138   : > { %v735_v30 = vpop.f32.mrf.mxu0 }
 0x139   : > { %v736_v31 = vadd.f32 %v735_v30, %v734_v28 }
 0x13a   : > { %v737_v32 = vpop.f32.mrf.mxu0 }
 0x13b   : > { %v449_v33 = vadd.f32 %v736_v31, %v685_v29 }
 0x13c   : > { %v738_v34 = vpop.f32.mrf.mxu0 }
 0x13d   : > { %v454_v35 = vmax.f32 %v449_v33, 0.0 }
 0x13f   : > { %v455_v36 = vpack.c.bf16 %v454_v35, %v454_v35 }
 0x141   : > { %766 = vmatmul.mubr.bf16.vlgmr.msra.gmra.mxu1 %v455_v36 }
 0x201   : > { %v561_v38 = vpop.f32.mrf.mxu1 }
 0x202   : > { %v562_v39 = vadd.f32 %v704_v37, %v561_v38 }
 0x203   : > { %v767_v40 = vpop.f32.mrf.mxu1 }
 0x204   : > { %v567_v41 = vmax.f32 %v562_v39, 0.0 }
 0x205   : > { %v564_v42 = vpop.f32.mrf.mxu1 }
 0x206   : > { %568 = vst [vmem:[%s269_s12] sm:$0xff] %v567_v41 }
 0x207   : > { %v768_v43 = vpop.f32.mrf.mxu1 }
 0x208   : > { %959 = shalt.err (!%p956_p9)
}
 0x209   : > { %s960_s17 = scalar_lea.hbm %s1207_s28, 128  ;;  %s964_s26 = scalar_lea.hbm %s1255_s5, 256 }
 0x20a   : > { %p961_p13 = scmp.ne.s32.totalorder %s1207_s28, %s960_s17  ;;  %p965_p4 = scmp.lt.s32.totalorder %s1207_s28, %s1255_s5 }
 0x20b   : > { %p966_p8 = scmp.lt.s32.totalorder %s964_s26, %s960_s17 }
 0x20c   : > { %p962_p5 = pnand %p961_p13, %p1271_p0 }
 0x20d   : > { %p967_p3 = por %p966_p8, %p965_p4 }
 0x20e   : > { %p963_p10 = pneg %p962_p5 }
 0x210   : > { %p968_p11 = pnand %p967_p3, %p963_p10 }
 0x212   : > { %971 = shalt.err (!%p968_p11)
}
 0x213   : > { %779 = dma.vmem_to_hbm [thread:$0]  (%p1271_p0), %s1209_s30, 128, %s1207_s28, %s570_s22  }
 0x214 PF: > { %s595_s11 = sand.u32 1, %s1002_s18   ;;  %p1272_p1 = scmp.ne.s32.totalorder %s1261_s25, 0 }
 0x215   : > { %p1273_p2 = scmp.ge.s32.totalorder %s1014_s21, 2  ;;  %s596_s12 = scalar_lea.sflag [#allocation4], %s595_s11 }
 0x217   : > { %p793_p6 = pnand %p1273_p2, %p1272_p1 }
 0x219   : > { %p794_p12 = pneg %p793_p6 }
 0x21b   : > { %997 = dma.done.wait (%p794_p12), %s596_s12, 128  }
 0x21c   : > { %999 = vsyncadd (%p794_p12), %s596_s12, 4294967168  ;;  %p19_p7 = scmp.ge.s32.totalorder %s1126_s15, 4   ;;  %s1274_s18 = smov %s1006_s19 }
 0x21d   : > { %s1275_s19 = smov %s1010_s20  ;;  %s1276_s20 = smov %s1142_s27 }
 0x21e   : > { %s1277_s21 = smov %s1126_s15  ;;  %21 = sbr.rel (!%p19_p7) target bundleno = 6 (0x6), region = 93 }
 0x223   :  { %601 = vsyncpa [#allocation3], 1 }
 0x224   :  { %603 = vsyncpa [#allocation3 + $0x1], 1 }
 0x225   :  { %604 = vsyncpa [#allocation6], 1 }
 0x226   :  { %605 = vsyncpa [#allocation4], 1 }
 0x227   :  { %607 = vsyncpa [#allocation4 + $0x1], 1 }

</bundles_post_ra>
